<compile_context>
chip_gen: v6e
topology: v6e:2x2x1
jax: 0.10.0
libtpu: 0.0.40
codegen_flags: <defaults>
</compile_context>

<pallas_src>
import functools
import math

import jax
import jax.numpy as jnp
from jax import lax
from jax.experimental import pallas as pl
from jax.experimental.pallas import tpu as pltpu


# ----------------------------------------------------------------------------
# Single-pass kernel: whole (C, S) slab per batch element resident in VMEM.
# ----------------------------------------------------------------------------
def _spatial_fusion_fused_kernel(f1_ref, f2_ref, w1a_ref, w1b_ref,
                                 w2a_ref, w2b_ref, out_ref):
    f1 = f1_ref[0].astype(jnp.float32)      # (C, S), lane-dense
    f2 = f2_ref[0].astype(jnp.float32)
    avg = f1 * f2

    # 1x1x1 conv == channel contraction on the MXU (weights pre-transposed to
    # (C_out, C_in) on the host; bias cancels inside InstanceNorm).
    z1 = (jnp.dot(w1a_ref[...], f1, preferred_element_type=jnp.float32)
          + jnp.dot(w1b_ref[...], avg, preferred_element_type=jnp.float32))
    z2 = (jnp.dot(w2a_ref[...], f2, preferred_element_type=jnp.float32)
          + jnp.dot(w2b_ref[...], avg, preferred_element_type=jnp.float32))

    eps = jnp.float32(1e-5)

    def inorm(z):
        m = jnp.mean(z, axis=1, keepdims=True)
        c = z - m
        v = jnp.mean(c * c, axis=1, keepdims=True)
        return c * lax.rsqrt(v + eps)

    a1 = jax.nn.sigmoid(inorm(z1))
    a2 = jax.nn.sigmoid(inorm(z2))
    # exp(a1) / (exp(a1) + exp(a2)) == sigmoid(a1 - a2)   (exact identity)
    sm1 = jax.nn.sigmoid(a1 - a2)
    out_ref[0] = (f2 + (f1 - f2) * sm1).astype(out_ref.dtype)


# ----------------------------------------------------------------------------
# Streaming kernel: two passes over spatial tiles, per-channel stats in VMEM.
# ----------------------------------------------------------------------------
def _spatial_fusion_stream_kernel(f1_ref, f2_ref, w1a_ref, w1b_ref,
                                  w2a_ref, w2b_ref, out_ref,
                                  s1_ref, q1_ref, s2_ref, q2_ref,
                                  *, s_total):
    p = pl.program_id(1)      # 0: accumulate statistics, 1: normalize + fuse
    sblk = pl.program_id(2)   # spatial tile index

    f1 = f1_ref[0].astype(jnp.float32)      # (C, TS)
    f2 = f2_ref[0].astype(jnp.float32)
    avg = f1 * f2

    z1 = (jnp.dot(w1a_ref[...], f1, preferred_element_type=jnp.float32)
          + jnp.dot(w1b_ref[...], avg, preferred_element_type=jnp.float32))
    z2 = (jnp.dot(w2a_ref[...], f2, preferred_element_type=jnp.float32)
          + jnp.dot(w2b_ref[...], avg, preferred_element_type=jnp.float32))

    @pl.when(jnp.logical_and(p == 0, sblk == 0))
    def _reset():
        zero = jnp.zeros_like(s1_ref)
        s1_ref[...] = zero
        q1_ref[...] = zero
        s2_ref[...] = zero
        q2_ref[...] = zero

    @pl.when(p == 0)
    def _accumulate():
        s1_ref[...] += jnp.sum(z1, axis=1, keepdims=True)
        q1_ref[...] += jnp.sum(z1 * z1, axis=1, keepdims=True)
        s2_ref[...] += jnp.sum(z2, axis=1, keepdims=True)
        q2_ref[...] += jnp.sum(z2 * z2, axis=1, keepdims=True)

    @pl.when(p == 1)
    def _normalize_and_fuse():
        eps = jnp.float32(1e-5)
        inv_s = jnp.float32(1.0 / s_total)
        # One-pass variance E[z^2] - m^2 (f32 accumulators, clamped >= 0).
        m1 = s1_ref[...] * inv_s
        v1 = jnp.maximum(q1_ref[...] * inv_s - m1 * m1, 0.0)
        m2 = s2_ref[...] * inv_s
        v2 = jnp.maximum(q2_ref[...] * inv_s - m2 * m2, 0.0)

        a1 = jax.nn.sigmoid((z1 - m1) * lax.rsqrt(v1 + eps))
        a2 = jax.nn.sigmoid((z2 - m2) * lax.rsqrt(v2 + eps))
        sm1 = jax.nn.sigmoid(a1 - a2)
        out_ref[0] = (f2 + (f1 - f2) * sm1).astype(out_ref.dtype)


# ----------------------------------------------------------------------------
# Host wrapper.
# ----------------------------------------------------------------------------
_VMEM_LIMIT = 48 * 1024 * 1024


def spatial_fusion_pallas(f1, f2, w1, b1, w2, b2, *, spatial_tile=None,
                          force_streaming=False):
    """SpatialFusion forward.

    f1, f2 : (N, C, D, H, W) float32 (PyTorch NCDHW layout).
    w1, w2 : (2C, C) channel-contraction weights (PyTorch Conv3d
             weight[co, ci, 0, 0, 0] transposed to [ci, co]).
    b1, b2 : (1, C) conv biases.  Unused by the kernel: a per-channel bias
             added before InstanceNorm3d(affine=False) cancels exactly.
    """
    del b1, b2  # cancels inside InstanceNorm (affine=False); exact equivalence
    N, C = f1.shape[0], f1.shape[1]
    S = math.prod(f1.shape[2:])
    f1_ncs = f1.reshape(N, C, S)   # free reshape, no transpose
    f2_ncs = f2.reshape(N, C, S)

    # Pre-transpose the tiny weights to (C_out, C_in) so in-kernel matmuls are
    # plain row-major MXU contractions.
    w1a, w1b = w1[:C].T, w1[C:].T
    w2a, w2b = w2[:C].T, w2[C:].T

    itemsize = jnp.dtype(f1.dtype).itemsize
    # Rough per-sample VMEM footprint for the single-pass path:
    #   3 slabs (f1, f2, out) x 2 pipeline buffers in input dtype
    #   + ~8 live f32 intermediates (avg, z1, z2, a1, a2, ...).
    fused_bytes = C * S * (6 * itemsize + 8 * 4)
    use_fused = (not force_streaming and spatial_tile is None
                 and fused_bytes <= int(0.75 * _VMEM_LIMIT))

    if use_fused:
        feat_spec = pl.BlockSpec((1, C, S), lambda n: (n, 0, 0))
        w_spec = pl.BlockSpec((C, C), lambda n: (0, 0))
        out = pl.pallas_call(
            _spatial_fusion_fused_kernel,
            out_shape=jax.ShapeDtypeStruct((N, C, S), f1.dtype),
            grid_spec=pltpu.PrefetchScalarGridSpec(
                num_scalar_prefetch=0,
                grid=(N,),
                in_specs=[feat_spec, feat_spec, w_spec, w_spec, w_spec, w_spec],
                out_specs=pl.BlockSpec((1, C, S), lambda n: (n, 0, 0)),
            ),
            compiler_params=pltpu.CompilerParams(
                dimension_semantics=("parallel",),
                vmem_limit_bytes=_VMEM_LIMIT,
            ),
        )(f1_ncs, f2_ncs, w1a, w1b, w2a, w2b)
        return out.reshape(f1.shape)

    # ---- Streaming two-pass path (large S, or explicitly requested). ----
    ts = spatial_tile
    if ts is None:
        ts = S
        tile_budget = int(0.75 * _VMEM_LIMIT)
        for cand in (8192, 4096, 2048, 1024, 512, 256, 128):
            if S % cand == 0 and C * cand * (6 * itemsize + 8 * 4) <= tile_budget:
                ts = cand
                break
    assert S % ts == 0, "spatial tile must divide D*H*W"
    if ts != S:
        assert ts % 128 == 0, "partial spatial tiles must be lane-aligned (x128)"

    feat_spec = pl.BlockSpec((1, C, ts), lambda n, p, s: (n, 0, s))
    w_spec = pl.BlockSpec((C, C), lambda n, p, s: (0, 0))
    # During pass 0 (p == 0) the output block index is pinned to tile 0 so the
    # (unwritten) output buffer is never flushed to HBM mid-pass.
    out_spec = pl.BlockSpec((1, C, ts), lambda n, p, s: (n, 0, s * p))

    kernel = functools.partial(_spatial_fusion_stream_kernel, s_total=S)
    out = pl.pallas_call(
        kernel,
        out_shape=jax.ShapeDtypeStruct((N, C, S), f1.dtype),
        grid_spec=pltpu.PrefetchScalarGridSpec(
            num_scalar_prefetch=0,
            grid=(N, 2, S // ts),
            in_specs=[feat_spec, feat_spec, w_spec, w_spec, w_spec, w_spec],
            out_specs=out_spec,
            scratch_shapes=[pltpu.VMEM((C, 1), jnp.float32)] * 4,
        ),
        compiler_params=pltpu.CompilerParams(
            dimension_semantics=("parallel", "arbitrary", "arbitrary"),
            vmem_limit_bytes=_VMEM_LIMIT,
        ),
    )(f1_ncs, f2_ncs, w1a, w1b, w2a, w2b)
    return out.reshape(f1.shape)


# ----------------------------------------------------------------------------
# Plain-JAX reference matching the PyTorch module (with conv bias).
# ----------------------------------------------------------------------------
def spatial_fusion_reference(f1, f2, w1, b1, w2, b2):
    shape = f1.shape
    N, C = shape[0], shape[1]
    S = math.prod(shape[2:])
    f1n = f1.reshape(N, C, S)
    f2n = f2.reshape(N, C, S)
    avg = f1n * f2n
    x1 = jnp.concatenate([f1n, avg], axis=1)   # (N, 2C, S)
    x2 = jnp.concatenate([f2n, avg], axis=1)
    z1 = jnp.einsum("nks,kc->ncs", x1, w1) + b1.reshape(1, C, 1)
    z2 = jnp.einsum("nks,kc->ncs", x2, w2) + b2.reshape(1, C, 1)
    eps = 1e-5

    def inorm(z):
        m = jnp.mean(z, axis=2, keepdims=True)
        v = jnp.mean((z - m) ** 2, axis=2, keepdims=True)
        return (z - m) / jnp.sqrt(v + eps)

    a1 = jax.nn.sigmoid(inorm(z1))
    a2 = jax.nn.sigmoid(inorm(z2))
    e1, e2 = jnp.exp(a1), jnp.exp(a2)
    out = f1n * (e1 / (e1 + e2)) + f2n * (e2 / (e1 + e2))
    return out.reshape(shape)


if __name__ == "__main__":
    key = jax.random.PRNGKey(0)
    k_f1, k_f2, k_w1, k_b1, k_w2, k_b2 = jax.random.split(key, 6)

    # Small NCDHW shapes: S = D*H*W = 256 -> lane-aligned spatial tiles.
    N, C, D, H, W = 2, 8, 4, 8, 8
    f1 = jax.random.normal(k_f1, (N, C, D, H, W), dtype=jnp.float32)
    f2 = jax.random.normal(k_f2, (N, C, D, H, W), dtype=jnp.float32)

    # PyTorch Conv3d(kernel=1) default init: U(-b, b), b = 1/sqrt(fan_in=2C).
    bound = 1.0 / math.sqrt(2 * C)
    w1 = jax.random.uniform(k_w1, (2 * C, C), jnp.float32, -bound, bound)
    b1 = jax.random.uniform(k_b1, (1, C), jnp.float32, -bound, bound)
    w2 = jax.random.uniform(k_w2, (2 * C, C), jnp.float32, -bound, bound)
    b2 = jax.random.uniform(k_b2, (1, C), jnp.float32, -bound, bound)

    # Fast single-pass path (whole (C, S) slab resident in VMEM).
    out_fused = spatial_fusion_pallas(f1, f2, w1, b1, w2, b2)
    # Streaming two-pass path, forced with 128-wide tiles so the stats
    # accumulation across multiple spatial tiles is exercised as well.
    out_stream = spatial_fusion_pallas(f1, f2, w1, b1, w2, b2,
                                       spatial_tile=128, force_streaming=True)
    out_fused, out_stream = jax.block_until_ready((out_fused, out_stream))

    ref = spatial_fusion_reference(f1, f2, w1, b1, w2, b2)
    assert out_fused.shape == f1.shape and out_stream.shape == f1.shape
    assert jnp.allclose(out_fused, ref, atol=1e-4, rtol=1e-4), \
        "single-pass kernel mismatch vs reference"
    assert jnp.allclose(out_stream, ref, atol=1e-4, rtol=1e-4), \
        "streaming kernel mismatch vs reference"

    print("KERNEL_OK")
</pallas_src>

<mosaic_0001>
module attributes {stable_mosaic.version = 11 : i64} {
  func.func @_spatial_fusion_fused_kernel(%arg0: i32, %arg1: memref<1x8x256xf32, #tpu.memory_space<vmem>>, %arg2: memref<1x8x256xf32, #tpu.memory_space<vmem>>, %arg3: memref<8x8xf32, #tpu.memory_space<vmem>>, %arg4: memref<8x8xf32, #tpu.memory_space<vmem>>, %arg5: memref<8x8xf32, #tpu.memory_space<vmem>>, %arg6: memref<8x8xf32, #tpu.memory_space<vmem>>, %arg7: memref<1x8x256xf32, #tpu.memory_space<vmem>>) attributes {dimension_semantics = [#tpu.dimension_semantics<parallel>], iteration_bounds = array<i64: 2>, scalar_prefetch = 0 : i64, scratch_operands = 0 : i64, tpu.core_type = #tpu.core_type<tc>, window_params = [{transform_indices = @transform_0, window_bounds = array<i64: 1, 8, 256>}, {transform_indices = @transform_1, window_bounds = array<i64: 1, 8, 256>}, {pipeline_mode = #tpu.pipeline_mode<synchronous>, transform_indices = @transform_2, window_bounds = array<i64: 8, 8>}, {pipeline_mode = #tpu.pipeline_mode<synchronous>, transform_indices = @transform_3, window_bounds = array<i64: 8, 8>}, {pipeline_mode = #tpu.pipeline_mode<synchronous>, transform_indices = @transform_4, window_bounds = array<i64: 8, 8>}, {pipeline_mode = #tpu.pipeline_mode<synchronous>, transform_indices = @transform_5, window_bounds = array<i64: 8, 8>}, {transform_indices = @transform_6, window_bounds = array<i64: 1, 8, 256>}]} {
    %c0 = arith.constant 0 : index
    %c0_0 = arith.constant 0 : index
    %c0_1 = arith.constant 0 : index
    %0 = vector.load %arg1[%c0, %c0_0, %c0_1] : memref<1x8x256xf32, #tpu.memory_space<vmem>>, vector<1x8x256xf32>
    %1 = vector.shape_cast %0 : vector<1x8x256xf32> to vector<8x256xf32>
    %c0_2 = arith.constant 0 : index
    %c0_3 = arith.constant 0 : index
    %c0_4 = arith.constant 0 : index
    %2 = vector.load %arg2[%c0_2, %c0_3, %c0_4] : memref<1x8x256xf32, #tpu.memory_space<vmem>>, vector<1x8x256xf32>
    %3 = vector.shape_cast %2 : vector<1x8x256xf32> to vector<8x256xf32>
    %4 = arith.mulf %1, %3 : vector<8x256xf32>
    %c0_5 = arith.constant 0 : index
    %c0_6 = arith.constant 0 : index
    %5 = vector.load %arg3[%c0_5, %c0_6] : memref<8x8xf32, #tpu.memory_space<vmem>>, vector<8x8xf32>
    %cst = arith.constant dense<0.000000e+00> : vector<8x256xf32>
    %6 = tpu.matmul %5, %1, %cst {dimension_numbers = #tpu.dot_dimension_numbers<[1], [0], [0], [1], [0, 0, 1, 1], [], []>} : vector<8x8xf32>, vector<8x256xf32>, vector<8x256xf32> -> vector<8x256xf32>
    %c0_7 = arith.constant 0 : index
    %c0_8 = arith.constant 0 : index
    %7 = vector.load %arg4[%c0_7, %c0_8] : memref<8x8xf32, #tpu.memory_space<vmem>>, vector<8x8xf32>
    %cst_9 = arith.constant dense<0.000000e+00> : vector<8x256xf32>
    %8 = tpu.matmul %7, %4, %cst_9 {dimension_numbers = #tpu.dot_dimension_numbers<[1], [0], [0], [1], [0, 0, 1, 1], [], []>} : vector<8x8xf32>, vector<8x256xf32>, vector<8x256xf32> -> vector<8x256xf32>
    %9 = arith.addf %6, %8 : vector<8x256xf32>
    %c0_10 = arith.constant 0 : index
    %c0_11 = arith.constant 0 : index
    %10 = vector.load %arg5[%c0_10, %c0_11] : memref<8x8xf32, #tpu.memory_space<vmem>>, vector<8x8xf32>
    %cst_12 = arith.constant dense<0.000000e+00> : vector<8x256xf32>
    %11 = tpu.matmul %10, %3, %cst_12 {dimension_numbers = #tpu.dot_dimension_numbers<[1], [0], [0], [1], [0, 0, 1, 1], [], []>} : vector<8x8xf32>, vector<8x256xf32>, vector<8x256xf32> -> vector<8x256xf32>
    %c0_13 = arith.constant 0 : index
    %c0_14 = arith.constant 0 : index
    %12 = vector.load %arg6[%c0_13, %c0_14] : memref<8x8xf32, #tpu.memory_space<vmem>>, vector<8x8xf32>
    %cst_15 = arith.constant dense<0.000000e+00> : vector<8x256xf32>
    %13 = tpu.matmul %12, %4, %cst_15 {dimension_numbers = #tpu.dot_dimension_numbers<[1], [0], [0], [1], [0, 0, 1, 1], [], []>} : vector<8x8xf32>, vector<8x256xf32>, vector<8x256xf32> -> vector<8x256xf32>
    %14 = arith.addf %11, %13 : vector<8x256xf32>
    %cst_16 = arith.constant dense<0.000000e+00> : vector<8xf32>
    %15 = vector.multi_reduction <add>, %9, %cst_16 [1] : vector<8x256xf32> to vector<8xf32>
    %16 = vector.shape_cast %15 : vector<8xf32> to vector<8x1xf32>
    %cst_17 = arith.constant 2.560000e+02 : f32
    %17 = vector.broadcast %cst_17 : f32 to vector<8x1xf32>
    %18 = arith.divf %16, %17 : vector<8x1xf32>
    %19 = vector.broadcast %18 : vector<8x1xf32> to vector<8x256xf32>
    %20 = arith.subf %9, %19 : vector<8x256xf32>
    %21 = arith.mulf %20, %20 : vector<8x256xf32>
    %cst_18 = arith.constant dense<0.000000e+00> : vector<8xf32>
    %22 = vector.multi_reduction <add>, %21, %cst_18 [1] : vector<8x256xf32> to vector<8xf32>
    %23 = vector.shape_cast %22 : vector<8xf32> to vector<8x1xf32>
    %cst_19 = arith.constant 2.560000e+02 : f32
    %24 = vector.broadcast %cst_19 : f32 to vector<8x1xf32>
    %25 = arith.divf %23, %24 : vector<8x1xf32>
    %cst_20 = arith.constant 9.99999974E-6 : f32
    %26 = vector.broadcast %cst_20 : f32 to vector<8x1xf32>
    %27 = arith.addf %25, %26 : vector<8x1xf32>
    %28 = math.rsqrt %27 : vector<8x1xf32>
    %29 = vector.broadcast %28 : vector<8x1xf32> to vector<8x256xf32>
    %30 = arith.mulf %20, %29 : vector<8x256xf32>
    %31 = arith.negf %30 : vector<8x256xf32>
    %32 = math.exp %31 : vector<8x256xf32>
    %cst_21 = arith.constant 1.000000e+00 : f32
    %33 = vector.broadcast %cst_21 : f32 to vector<8x256xf32>
    %34 = arith.addf %33, %32 : vector<8x256xf32>
    %35 = arith.divf %33, %34 : vector<8x256xf32>
    %cst_22 = arith.constant dense<0.000000e+00> : vector<8xf32>
    %36 = vector.multi_reduction <add>, %14, %cst_22 [1] : vector<8x256xf32> to vector<8xf32>
    %37 = vector.shape_cast %36 : vector<8xf32> to vector<8x1xf32>
    %cst_23 = arith.constant 2.560000e+02 : f32
    %38 = vector.broadcast %cst_23 : f32 to vector<8x1xf32>
    %39 = arith.divf %37, %38 : vector<8x1xf32>
    %40 = vector.broadcast %39 : vector<8x1xf32> to vector<8x256xf32>
    %41 = arith.subf %14, %40 : vector<8x256xf32>
    %42 = arith.mulf %41, %41 : vector<8x256xf32>
    %cst_24 = arith.constant dense<0.000000e+00> : vector<8xf32>
    %43 = vector.multi_reduction <add>, %42, %cst_24 [1] : vector<8x256xf32> to vector<8xf32>
    %44 = vector.shape_cast %43 : vector<8xf32> to vector<8x1xf32>
    %cst_25 = arith.constant 2.560000e+02 : f32
    %45 = vector.broadcast %cst_25 : f32 to vector<8x1xf32>
    %46 = arith.divf %44, %45 : vector<8x1xf32>
    %cst_26 = arith.constant 9.99999974E-6 : f32
    %47 = vector.broadcast %cst_26 : f32 to vector<8x1xf32>
    %48 = arith.addf %46, %47 : vector<8x1xf32>
    %49 = math.rsqrt %48 : vector<8x1xf32>
    %50 = vector.broadcast %49 : vector<8x1xf32> to vector<8x256xf32>
    %51 = arith.mulf %41, %50 : vector<8x256xf32>
    %52 = arith.negf %51 : vector<8x256xf32>
    %53 = math.exp %52 : vector<8x256xf32>
    %cst_27 = arith.constant 1.000000e+00 : f32
    %54 = vector.broadcast %cst_27 : f32 to vector<8x256xf32>
    %55 = arith.addf %54, %53 : vector<8x256xf32>
    %56 = arith.divf %54, %55 : vector<8x256xf32>
    %57 = arith.subf %35, %56 : vector<8x256xf32>
    %58 = arith.negf %57 : vector<8x256xf32>
    %59 = math.exp %58 : vector<8x256xf32>
    %cst_28 = arith.constant 1.000000e+00 : f32
    %60 = vector.broadcast %cst_28 : f32 to vector<8x256xf32>
    %61 = arith.addf %60, %59 : vector<8x256xf32>
    %62 = arith.divf %60, %61 : vector<8x256xf32>
    %63 = arith.subf %1, %3 : vector<8x256xf32>
    %64 = arith.mulf %63, %62 : vector<8x256xf32>
    %65 = arith.addf %3, %64 : vector<8x256xf32>
    %c0_29 = arith.constant 0 : index
    %c0_30 = arith.constant 0 : index
    %c0_31 = arith.constant 0 : index
    %66 = vector.load %arg7[%c0_29, %c0_30, %c0_31] : memref<1x8x256xf32, #tpu.memory_space<vmem>>, vector<1x8x256xf32>
    %67 = vector.shape_cast %66 : vector<1x8x256xf32> to vector<8x256xf32>
    %68 = vector.shape_cast %65 : vector<8x256xf32> to vector<1x8x256xf32>
    tpu.vector_store %arg7[%c0_29, %c0_30, %c0_31], %68 {strides = array<i32>} : memref<1x8x256xf32, #tpu.memory_space<vmem>>, vector<1x8x256xf32>,
    return
  }
  func.func @transform_0(%arg0: i32) -> (i32, i32, i32) {
    %c0_i32 = arith.constant 0 : i32
    %c0_i32_0 = arith.constant 0 : i32
    %c0_i32_1 = arith.constant 0 : i32
    return %arg0, %c0_i32, %c0_i32_0 : i32, i32, i32
  }
  func.func @transform_1(%arg0: i32) -> (i32, i32, i32) {
    %c0_i32 = arith.constant 0 : i32
    %c0_i32_0 = arith.constant 0 : i32
    %c0_i32_1 = arith.constant 0 : i32
    return %arg0, %c0_i32, %c0_i32_0 : i32, i32, i32
  }
  func.func @transform_2(%arg0: i32) -> (i32, i32) {
    %c0_i32 = arith.constant 0 : i32
    %c0_i32_0 = arith.constant 0 : i32
    %c0_i32_1 = arith.constant 0 : i32
    return %c0_i32, %c0_i32_0 : i32, i32
  }
  func.func @transform_3(%arg0: i32) -> (i32, i32) {
    %c0_i32 = arith.constant 0 : i32
    %c0_i32_0 = arith.constant 0 : i32
    %c0_i32_1 = arith.constant 0 : i32
    return %c0_i32, %c0_i32_0 : i32, i32
  }
  func.func @transform_4(%arg0: i32) -> (i32, i32) {
    %c0_i32 = arith.constant 0 : i32
    %c0_i32_0 = arith.constant 0 : i32
    %c0_i32_1 = arith.constant 0 : i32
    return %c0_i32, %c0_i32_0 : i32, i32
  }
  func.func @transform_5(%arg0: i32) -> (i32, i32) {
    %c0_i32 = arith.constant 0 : i32
    %c0_i32_0 = arith.constant 0 : i32
    %c0_i32_1 = arith.constant 0 : i32
    return %c0_i32, %c0_i32_0 : i32, i32
  }
  func.func @transform_6(%arg0: i32) -> (i32, i32, i32) {
    %c0_i32 = arith.constant 0 : i32
    %c0_i32_0 = arith.constant 0 : i32
    %c0_i32_1 = arith.constant 0 : i32
    return %arg0, %c0_i32, %c0_i32_0 : i32, i32, i32
  }
}

</mosaic_0001>

<bundles_post_ra>
// kernel: tpu_custom_call.1
= control target key start
LH: loop header
LB: loop body
LE: loop exit
PB: predicated region body
PF: predicated region fallthrough
CT: control target
= control target key end

     0   :  { %s1530_s0 = inlined_call_operand.hbm [shape: f32[2,8,256], index: 0, kind: input, shape index: {}]   ;;  %s1531_s1 = inlined_call_operand.hbm [shape: f32[2,8,256], index: 1, kind: input, shape index: {}]   ;;  %s1532_s2 = inlined_call_operand.hbm [shape: f32[8,8], index: 2, kind: input, shape index: {}]   ;;  %s1533_s3 = inlined_call_operand.hbm [shape: f32[8,8], index: 3, kind: input, shape index: {}]   ;;  %s1534_s4 = inlined_call_operand.hbm [shape: f32[8,8], index: 4, kind: input, shape index: {}]   ;;  %s1535_s5 = inlined_call_operand.vmem [shape: f32[8,8], index: 5, kind: input, shape index: {}]   ;;  %s1536_s6 = inlined_call_operand.hbm [shape: f32[2,8,256], index: 6, kind: output, shape index: {}]  }
   0x1   :  { %1541 = sst [smem:[#allocation17_spill]] %s1532_s2 }
   0x2   :  { %1542 = sst [smem:[#allocation18_spill]] %s1533_s3 }
   0x3   :  { %1543 = sst [smem:[#allocation19_spill]] %s1534_s4 }
   0x4   :  { %11 = vsyncpa [#allocation3], 0 }
   0x5   :  { %13 = vsyncpa [#allocation3 + $0x1], 0 }
   0x6   :  { %14 = vsyncpa [#allocation6], 0 }
   0x7   :  { %16 = vsyncpa [#allocation6 + $0x1], 0 }
   0x8   :  { %17 = vsyncpa [#allocation9], 0 }
   0x9   :  { %18 = vsyncpa [#allocation4], 0 }
   0xa   :  { %20 = vsyncpa [#allocation4 + $0x1], 0  ;;  %s1267_s21 = smov 0   ;;  %s1269_s22 = smov 0  }
   0xb   :  { %s1271_s23 = smov 0   ;;  %s1273_s24 = smov 0  }
   0xc LB: > { %s1288_s25 = sadd.s32 4294967295, %s1223_s24   ;;  %s865_s26 = sadd.s32 4294967294, %s1223_s24   ;;  %s1223_s24 = sphi %s1273_s24, %s1566_s24   ;;  %s1219_s23 = sphi %s1271_s23, %s1565_s23   ;;  %s1215_s22 = sphi %s1269_s22, %s1564_s22   ;;  %s1211_s21 = sphi %s1267_s21, %s1563_s21  }
   0xd   : > { %p46_p0 = scmp.ne.s32.totalorder %s1215_s22, %s1211_s21  ;;  %p1537_p1 = scmp.eq.s32.totalorder %s1288_s25, 0 }
   0xe   : > { %p186_p3 = scmp.eq.s32.totalorder %s865_s26, 1  ;;  %p866_p5 = scmp.ge.s32.totalorder %s1223_s24, 1 }
   0xf   : > { %p1297_p4 = por %p1537_p1, %p46_p0  ;;  %p193_p7 = scmp.lt.s32.totalorder %s1223_s24, 3 }
  0x10   : > { %p1302_p6 = por %p186_p3, %p46_p0  ;;  %s1225_s30 = smov [#allocation7]  }
  0x11   : > { %s1544_s27 = scalar_select %p1297_p4, 1, 0 }
  0x12   : > { %s1545_s28 = scalar_select %p1302_p6, 1, 0 }
  0x13   : > { %p1307_p8 = pnand %p866_p5, %p193_p7  ;;  %s206_s7 = sshll.u32 %s1225_s30, 4  ;;  %s207_s7 = int_to_ptr.vmem [resolvable:$true] %s206_s7 }
  0x14   : > { %s1226_s8 = smov [#allocation8]   ;;  %s1227_s11 = smov [#allocation10]  }
  0x15   : > { %s1546_s29 = scalar_select %p1307_p8, 1, 0 }
  0x16   : > { %p920_p10 = pneg %p1307_p8  ;;  %s217_s9 = sshll.u32 %s1226_s8, 4  ;;  %s218_s9 = int_to_ptr.vmem [resolvable:$true] %s217_s9 }
  0x17   : > { %s228_s12 = sshll.u32 %s1227_s11, 4  ;;  %s1024_s13 = scalar_lea.vmem %s207_s7, 128  ;;  %s1320_s12 = int_to_ptr.vmem [resolvable:$true] %s228_s12 }
  0x18   : > { %p1316_p11 = pnand %p920_p10, %p1537_p1  ;;  %p1025_p13 = scmp.ne.s32.totalorder %s207_s7, %s1024_s13 }
  0x19   : > { %p1032_p5 = scmp.lt.s32.totalorder %s207_s7, %s207_s7  ;;  %p1033_p7 = scmp.lt.s32.totalorder %s1024_s13, %s1024_s13 }
  0x1a   : > { %p1015_p12 = pneg %p1316_p11 }
  0x1b   : > { %p1034_p10 = por %p1033_p7, %p1032_p5 }
  0x1c   : > { %p1027_p0 = pnand %p1025_p13, %p1015_p12 }
  0x1e   : > { %p1028_p3 = pneg %p1027_p0 }
  0x20   : > { %p1035_p9 = pnand %p1034_p10, %p1028_p3 }
  0x22   : > { %1038 = shalt.err (!%p1035_p9)
}
  0x23   : > { %s1548_s2 = sld [smem:[#allocation17_spill]]  ;;  %s1050_s16 = scalar_lea.vmem %s218_s9, 128 }
  0x24   : > { %p1051_p1 = scmp.ne.s32.totalorder %s218_s9, %s1050_s16  ;;  %p1058_p13 = scmp.lt.s32.totalorder %s218_s9, %s218_s9 }
  0x25   : > { %p1059_p0 = scmp.lt.s32.totalorder %s1050_s16, %s1050_s16 }
  0x26   : > { %p1053_p2 = pnand %p1051_p1, %p1015_p12 }
  0x27   : > { %p1060_p4 = por %p1059_p0, %p1058_p13 }
  0x28   : > { %p1054_p6 = pneg %p1053_p2 }
  0x29   : > { %923 = dma.hbm_to_vmem [thread:$0]  (!%p1316_p11), %s1548_s2, 128, %s207_s7, [#allocation6]  }
  0x2a   : > { %p1061_p8 = pnand %p1060_p4, %p1054_p6 }
  0x2c   : > { %1064 = shalt.err (!%p1061_p8)
}
  0x2d   : > { %s1549_s3 = sld [smem:[#allocation18_spill]]  ;;  %s1076_s19 = scalar_lea.vmem %s1320_s12, 128 }
  0x2e   : > { %p1077_p9 = scmp.ne.s32.totalorder %s1320_s12, %s1076_s19  ;;  %p1084_p3 = scmp.lt.s32.totalorder %s1320_s12, %s1320_s12 }
  0x2f   : > { %p1085_p4 = scmp.lt.s32.totalorder %s1076_s19, %s1076_s19 }
  0x30   : > { %p1079_p1 = pnand %p1077_p9, %p1015_p12 }
  0x31   : > { %p1086_p6 = por %p1085_p4, %p1084_p3 }
  0x32   : > { %p1080_p2 = pneg %p1079_p1 }
  0x33   : > { %926 = dma.hbm_to_vmem [thread:$0]  (!%p1316_p11), %s1549_s3, 128, %s218_s9, [#allocation9]  }
  0x34   : > { %p1087_p8 = pnand %p1086_p6, %p1080_p2 }
  0x36   : > { %1090 = shalt.err (!%p1087_p8)
}
  0x37   : > { %s1550_s4 = sld [smem:[#allocation19_spill]]  ;;  %s1354_s30 = sadd.s32 1, %s1223_s24  }
  0x38   : > { %s30_s7 = ssub.s32 %s1223_s24, %s1354_s30  ;;  %s33_s8 = sadd.s32 1, %s1219_s23 }
  0x39   : > { %p31_p12 = scmp.eq.s32.totalorder %s30_s7, 0  ;;  %p40_p5 = scmp.ne.s32.totalorder %s1219_s23, %s1215_s22 }
  0x3a   : > { %p41_p7 = scmp.eq.s32.totalorder %s1223_s24, 0  ;;  %p944_p10 = scmp.lt.s32.totalorder %s1223_s24, 2 }
  0x3b   : > { %s1364_s9 = scalar_select %p31_p12, %s1219_s23, %s33_s8  }
  0x3c   : > { %p42_p13 = por %p41_p7, %p40_p5  ;;  %p1551_p0 = scmp.eq.s32.totalorder %s1288_s25, 1 }
  0x3d   : > { %929 = dma.hbm_to_vmem [thread:$0]  (!%p1316_p11), %s1550_s4, 128, %s1320_s12, [#allocation9]  }
  0x3e   : > { %p1368_p9 = por %p1551_p0, %p40_p5  ;;  %s242_s11 = sand.u32 1, %s1219_s23  }
  0x3f   : > { %s899_s13 = sshll.u32 %s1223_s24, 8  ;;  %s1374_s12 = sshll.u32 %s242_s11, 4 }
  0x40   : > { %s1552_s10 = scalar_select %p1368_p9, 1, 0 }
  0x41   : > { %s1379_s16 = scalar_lea.hbm %s1530_s0, %s899_s13  ;;  %s246_s17 = scalar_lea.vmem [#allocation2], %s1374_s12 }
  0x42   : > { %s254_s18 = sshll.u32 %s246_s17, 4  ;;  %p1382_p11 = pnand %p944_p10, %p42_p13  ;;  %s255_s18 = int_to_ptr.vmem [resolvable:$true] %s254_s18 }
  0x43   : > { %s1389_s7 = scalar_lea.hbm %s1531_s1, %s899_s13  ;;  %s243_s8 = scalar_lea.sflag [#allocation3], %s242_s11 }
  0x44   : > { %s1091_s14 = scalar_lea.hbm %s1379_s16, 256  ;;  %p1093_p2 = pneg %p1382_p11 }
  0x45   : > { %p1092_p1 = scmp.ne.s32.totalorder %s1379_s16, %s1091_s14  ;;  %s1096_s2 = scalar_lea.hbm %s1530_s0, 512 }
  0x46   : > { %p1097_p6 = scmp.lt.s32.totalorder %s1379_s16, %s1530_s0  ;;  %p1098_p8 = scmp.lt.s32.totalorder %s1096_s2, %s1091_s14 }
  0x47   : > { %p1094_p3 = pnand %p1093_p2, %p1092_p1 }
  0x48   : > { %p1099_p12 = por %p1098_p8, %p1097_p6 }
  0x49   : > { %p1095_p4 = pneg %p1094_p3 }
  0x4b   : > { %p1100_p5 = pnand %p1099_p12, %p1095_p4 }
  0x4d   : > { %1103 = shalt.err (!%p1100_p5)
}
  0x4e   : > { %s1104_s11 = scalar_lea.vmem %s255_s18, 256  ;;  %s1228_s13 = smov [#allocation2]  }
  0x4f   : > { %p1105_p7 = scmp.ne.s32.totalorder %s255_s18, %s1104_s11  ;;  %s1109_s20 = sshll.u32 %s1228_s13, 4  ;;  %s1110_s20 = int_to_ptr.vmem [resolvable:$false] %s1109_s20 }
  0x50   : > { %s1111_s26 = scalar_lea.vmem %s1110_s20, 512  ;;  %p1112_p0 = scmp.lt.s32.totalorder %s255_s18, %s1110_s20 }
  0x51   : > { %p1107_p10 = pnand %p1105_p7, %p1093_p2  ;;  %p1113_p1 = scmp.lt.s32.totalorder %s1111_s26, %s1104_s11 }
  0x53   : > { %p1108_p13 = pneg %p1107_p10  ;;  %p1114_p3 = por %p1113_p1, %p1112_p0 }
  0x55   : > { %p1115_p9 = pnand %p1114_p3, %p1108_p13 }
  0x57   : > { %1118 = shalt.err (!%p1115_p9)
}
  0x58   : > { %933 = dma.hbm_to_vmem [thread:$0]  (!%p1382_p11), %s1379_s16, 256, %s255_s18, %s243_s8  }
  0x59   : > { %s261_s2 = sand.u32 1, %s1223_s24   ;;  %s265_s3 = scalar_lea.vmem [#allocation5], %s1374_s12 }
  0x5a   : > { %s273_s4 = sshll.u32 %s265_s3, 4  ;;  %s262_s14 = scalar_lea.sflag [#allocation6], %s261_s2  ;;  %s274_s4 = int_to_ptr.vmem [resolvable:$true] %s273_s4 }
  0x5b   : > { %s1119_s15 = scalar_lea.hbm %s1389_s7, 256  ;;  %s1124_s13 = scalar_lea.hbm %s1531_s1, 512 }
  0x5c   : > { %p1120_p4 = scmp.ne.s32.totalorder %s1389_s7, %s1119_s15  ;;  %p1125_p8 = scmp.lt.s32.totalorder %s1389_s7, %s1531_s1 }
  0x5d   : > { %p1126_p12 = scmp.lt.s32.totalorder %s1124_s13, %s1119_s15 }
  0x5e   : > { %p1122_p9 = pnand %p1120_p4, %p1093_p2 }
  0x5f   : > { %p1127_p5 = por %p1126_p12, %p1125_p8 }
  0x60   : > { %p1123_p6 = pneg %p1122_p9 }
  0x62   : > { %p1128_p7 = pnand %p1127_p5, %p1123_p6 }
  0x64   : > { %1131 = shalt.err (!%p1128_p7)
}
  0x65   : > { %s1132_s12 = scalar_lea.vmem %s274_s4, 256  ;;  %s1229_s16 = smov [#allocation5]  }
  0x66   : > { %p1133_p10 = scmp.ne.s32.totalorder %s274_s4, %s1132_s12  ;;  %s1137_s18 = sshll.u32 %s1229_s16, 4  ;;  %s1138_s18 = int_to_ptr.vmem [resolvable:$false] %s1137_s18 }
  0x67   : > { %s1139_s8 = scalar_lea.vmem %s1138_s18, 512  ;;  %p1140_p1 = scmp.lt.s32.totalorder %s274_s4, %s1138_s18 }
  0x68   : > { %p1135_p13 = pnand %p1133_p10, %p1093_p2  ;;  %p1141_p3 = scmp.lt.s32.totalorder %s1139_s8, %s1132_s12 }
  0x6a   : > { %p1136_p0 = pneg %p1135_p13  ;;  %p1142_p4 = por %p1141_p3, %p1140_p1 }
  0x6c   : > { %p1143_p9 = pnand %p1142_p4, %p1136_p0 }
  0x6e   : > { %1146 = shalt.err (!%p1143_p9)
}
  0x6f   : > { %936 = dma.hbm_to_vmem [thread:$0]  (!%p1382_p11), %s1389_s7, 256, %s274_s4, %s262_s14  }
  0x70   : > { %p1554_p6 = scmp.ne.s32.totalorder %s1546_s29, 0 }
  0x71   : > { %s1434_s2 = sand.u32 (!%p1554_p6), 1, %s1215_s22   ;;  %p1555_p2 = scmp.ne.s32.totalorder (!%p1554_p6), %s1544_s27, 0 }
  0x72   : > { %282 = sbr.rel (%p1554_p6) target bundleno = 727 (0x2d7), region = 44  ;;  %s1437_s3 = sshll.u32 (!%p1554_p6), %s1434_s2, 4 }
  0x73   : > { %s285_s15 = scalar_lea.sflag (!%p1554_p6), [#allocation3], %s1434_s2  ;;  %s288_s17 = scalar_lea.vmem (!%p1554_p6), [#allocation2], %s1437_s3 }
  0x77   : > { %1190 = dma.done.wait (%p1555_p2), %s285_s15, 256  }
  0x78   : > { %1192 = vsyncadd (%p1555_p2), %s285_s15, 4294967040  ;;  %s293_s29 = sand.u32 1, %s1288_s25   ;;  %s297_s7 = scalar_lea.vmem [#allocation5], %s1437_s3 }
  0x79   : > { %s294_s19 = scalar_lea.sflag [#allocation6], %s293_s29 }
  0x7a   : > { %1194 = dma.done.wait (%p1555_p2), %s294_s19, 256  }
  0x7b   : > { %1196 = vsyncadd (%p1555_p2), %s294_s19, 4294967040  ;;  %p1556_p11 = scmp.eq.s32.totalorder %s1288_s25, 0 }
  0x7d   : > { %1198 = dma.done.wait (%p1556_p11), [#allocation6], 128   ;;  %p1557_p8 = pmov %p1556_p11 }
  0x7f   : > { %1200 = vsyncadd (%p1557_p8), [#allocation6], 4294967168  ;;  %p1558_p12 = pmov %p1557_p8 }
  0x80   : > { %p1559_p5 = pmov %p1557_p8 }
  0x81   : > { %1202 = dma.done.wait (%p1558_p12), [#allocation9], 256  }
  0x82   : > { %1204 = vsyncadd (%p1559_p5), [#allocation9], 4294967040  ;;  %v1230_v0 = vmov 0.0   ;;  %v1459_v1 = vld [vmem:[%s288_s17 + $0x8] sm:$0xff]  ;;  %v1463_v3 = vld [vmem:[%s288_s17] sm:$0xff]  ;;  %vm351_vm0 = vcmask 64512  }
  0x83   : > { %493 = vmatprep.mubr.f32.mxu1 %v1230_v0  ;;  %419 = vmatprep.mubr.f32.mxu0 %v1230_v0  ;;  %v1461_v2 = vld [vmem:[%s297_s7 + $0x8] sm:$0xff]  ;;  %v1468_v5 = vld [vmem:[%s297_s7] sm:$0xff]  ;;  %s901_s14 = sshll.u32 %s1288_s25, 8  ;;  %s342_s11 = scalar_lea.vmem [#allocation11], %s1437_s3 }
  0x84   : > { %459 = vmatprep.subr.mxu1 %v1459_v1  ;;  %v348_v4 = vmul.f32 %v1461_v2, %v1459_v1  ;;  %v349_v6 = vld [vmem:[#allocation7] sm:$0xff]  ;;  %v347_v7 = vmul.f32 %v1468_v5, %v1463_v3  ;;  %v350_v8 = vld [vmem:[#allocation8] sm:$0xff]  ;;  %v500_v9 = vld [vmem:[#allocation10] sm:$0xff]  ;;  %s744_s13 = sshll.u32 %s342_s11, 4  ;;  %s1493_s12 = scalar_lea.hbm %s1536_s6, %s901_s14  ;;  %s745_s13 = int_to_ptr.vmem [resolvable:$true] %s744_s13 }
  0x85   : > { %460 = vmatpush1.msra.mxu1 %v1463_v3  ;;  %v501_v10 = vld [vmem:[%s1535_s5] sm:$0xff]  ;;  %s730_s16 = scalar_lea.sflag [#allocation4], %s1434_s2  ;;  %s1147_s18 = scalar_lea.vmem %s745_s13, 256 }
  0x86   : > { %385 = vmatprep.subr.mxu0 %v348_v4  ;;  %885 = vmatmul.mubr.msk.f32.vlgmr.msra.gmra.mxu1 %vm351_vm0, %v349_v6  ;;  %p1148_p7 = scmp.ne.s32.totalorder %s745_s13, %s1147_s18  ;;  %p1560_p10 = scmp.ne.s32.totalorder %s1552_s10, 0 }
  0x87   : > { %386 = vmatpush1.msra.mxu0 %v347_v7  ;;  %609 = vmatprep.subr.mxu1 %v1461_v2  ;;  %s1231_s25 = smov [#allocation11]  }
  0x88   : > { %884 = vmatmul.mubr.msk.f32.vlgmr.msra.gmra.mxu0 %vm351_vm0, %v350_v8  ;;  %535 = vmatprep.subr.mxu0 %v348_v4  ;;  %p1149_p13 = pnand %p1148_p7, %p1560_p10  ;;  %s1151_s8 = sshll.u32 %s1231_s25, 4  ;;  %s1152_s8 = int_to_ptr.vmem [resolvable:$false] %s1151_s8 }
  0x89   : > { %536 = vmatpush1.msra.mxu0 %v347_v7  ;;  %610 = vmatpush1.msra.mxu1 %v1468_v5  ;;  %s1153_s3 = scalar_lea.vmem %s1152_s8, 512  ;;  %p1154_p1 = scmp.lt.s32.totalorder %s745_s13, %s1152_s8 }
  0x8a   : > { %643 = vmatprep.mubr.f32.mxu1 %v1230_v0  ;;  %569 = vmatprep.mubr.f32.mxu0 %v1230_v0  ;;  %p1150_p0 = pneg %p1149_p13  ;;  %p1155_p3 = scmp.lt.s32.totalorder %s1153_s3, %s1147_s18 }
  0x8b   : > { %887 = vmatmul.mubr.msk.f32.vlgmr.msra.gmra.mxu1 %vm351_vm0, %v500_v9 }
  0x8c   : > { %886 = vmatmul.mubr.msk.f32.vlgmr.msra.gmra.mxu0 %vm351_vm0, %v501_v10  ;;  %p1156_p4 = por %p1155_p3, %p1154_p1 }
  0x8e   : > { %p1157_p9 = pnand %p1156_p4, %p1150_p0 }
 0x146   : > { %v495_v11 = vpop.f32.mrf.mxu1 }
 0x148   : > { %v421_v12 = vpop.f32.mrf.mxu0  ;;  %v497_v13 = vpop.f32.mrf.mxu1 }
 0x149   : > { %v496_v15 = vadd.f32 %v495_v11, %v421_v12 }
 0x14a   : > { %v423_v14 = vpop.f32.mrf.mxu0 }
 0x14b   : > { %v498_v16 = vadd.f32 %v497_v13, %v423_v14  ;;  %v645_v17 = vpop.f32.mrf.mxu1 }
 0x14c   : > { %v571_v18 = vpop.f32.mrf.mxu0 }
 0x14d   : > { %v650_v19 = vadd.f32 %v498_v16, %v496_v15  ;;  %v647_v20 = vpop.f32.mrf.mxu1  ;;  %v646_v22 = vadd.f32 %v645_v17, %v571_v18 }
 0x14e   : > { %v573_v21 = vpop.f32.mrf.mxu0 }
 0x14f   : > { %v648_v23 = vadd.f32 %v647_v20, %v573_v21  ;;  %651 = vadd.xlane.f32.xlu0 %v650_v19 }
 0x151   : > { %v679_v24 = vadd.f32 %v648_v23, %v646_v22 }
 0x153   : > { %680 = vadd.xlane.f32.xlu0 %v679_v24 }
 0x1d8   : > { %v652_v25 = vpop.xlane.xlu0 %651 }
 0x1d9   : > { %v654_v26 = vmul.f32 0.00390625, %v652_v25 }
 0x1db   : > { %v655_v27 = vsub.f32 %v496_v15, %v654_v26  ;;  %v656_v28 = vsub.f32 %v498_v16, %v654_v26  ;;  %v721_v15 = vsub.f32 %v1463_v3, %v1468_v5  ;;  %v722_v16 = vsub.f32 %v1459_v1, %v1461_v2 }
 0x1dc   : > { %v681_v29 = vpop.xlane.xlu0 %680 }
 0x1dd   : > { %v682_v30 = vmul.f32 0.00390625, %v681_v29  ;;  %v657_v31 = vmul.f32 %v655_v27, %v655_v27  ;;  %v658_v32 = vmul.f32 %v656_v28, %v656_v28 }
 0x1df   : > { %v683_v33 = vsub.f32 %v646_v22, %v682_v30  ;;  %v684_v34 = vsub.f32 %v648_v23, %v682_v30  ;;  %v659_v35 = vadd.f32 %v658_v32, %v657_v31 }
 0x1e1   : > { %660 = vadd.xlane.f32.xlu1 %v659_v35  ;;  %v685_v36 = vmul.f32 %v683_v33, %v683_v33  ;;  %v686_v37 = vmul.f32 %v684_v34, %v684_v34 }
 0x1e3   : > { %v687_v38 = vadd.f32 %v686_v37, %v685_v36 }
 0x1e5   : > { %688 = vadd.xlane.f32.xlu1 %v687_v38 }
 0x26a   : > { %v661_v39 = vpop.xlane.xlu1 %660 }
 0x26b   : > { %v662_v40 = vmul.f32 0.00390625, %v661_v39 }
 0x26d   : > { %v663_v41 = vadd.f32 1e-05, %v662_v40 }
 0x26e   : > { %v689_v42 = vpop.xlane.xlu1 %688 }
 0x26f   : > { %985 = vrsqrt.f32 %v663_v41  ;;  %v690_v43 = vmul.f32 0.00390625, %v689_v42 }
 0x271   : > { %v691_v44 = vadd.f32 1e-05, %v690_v43 }
 0x273   : > { %987 = vrsqrt.f32 %v691_v44 }
 0x27c   : > { %v986_v45 = vpop.eup %985 }
 0x27d   : > { %v665_v46 = vmul.f32 %v986_v45, %v655_v27  ;;  %v666_v47 = vmul.f32 %v986_v45, %v656_v28 }
 0x27f   : > { %v888_v48 = vmul.f32 -1.442695, %v665_v46  ;;  %v889_v49 = vmul.f32 -1.442695, %v666_v47 }
 0x280   : > { %v988_v50 = vpop.eup %987 }
 0x281   : > { %989 = vpow2.f32 %v888_v48  ;;  %v693_v51 = vmul.f32 %v988_v50, %v683_v33  ;;  %v694_v52 = vmul.f32 %v988_v50, %v684_v34 }
 0x282   : > { %991 = vpow2.f32 %v889_v49 }
 0x283   : > { %v890_v53 = vmul.f32 -1.442695, %v693_v51  ;;  %v891_v54 = vmul.f32 -1.442695, %v694_v52 }
 0x285   : > { %993 = vpow2.f32 %v890_v53 }
 0x286   : > { %995 = vpow2.f32 %v891_v54 }
 0x28e   : > { %v990_v55 = vpop.eup %989 }
 0x28f   : > { %v992_v56 = vpop.eup %991  ;;  %v673_v57 = vadd.f32 1.0, %v990_v55 }
 0x290   : > { %v674_v58 = vadd.f32 1.0, %v992_v56 }
 0x291   : > { %997 = vrcp.f32 %v673_v57 }
 0x292   : > { %v994_v59 = vpop.eup %993  ;;  %999 = vrcp.f32 %v674_v58 }
 0x293   : > { %v996_v60 = vpop.eup %995  ;;  %v701_v61 = vadd.f32 1.0, %v994_v59 }
 0x294   : > { %v702_v62 = vadd.f32 1.0, %v996_v60 }
 0x295   : > { %1001 = vrcp.f32 %v701_v61 }
 0x296   : > { %1003 = vrcp.f32 %v702_v62 }
 0x29e   : > { %v998_v63 = vpop.eup %997 }
 0x29f   : > { %v1000_v0 = vpop.eup %999 }
 0x2a2   : > { %v1002_v4 = vpop.eup %1001 }
 0x2a3   : > { %v1004_v6 = vpop.eup %1003  ;;  %v707_v7 = vsub.f32 %v998_v63, %v1002_v4 }
 0x2a4   : > { %v708_v8 = vsub.f32 %v1000_v0, %v1004_v6 }
 0x2a5   : > { %v892_v9 = vmul.f32 -1.442695, %v707_v7 }
 0x2a6   : > { %v893_v10 = vmul.f32 -1.442695, %v708_v8 }
 0x2a7   : > { %1005 = vpow2.f32 %v892_v9 }
 0x2a8   : > { %1007 = vpow2.f32 %v893_v10 }
 0x2b4   : > { %v1006_v11 = vpop.eup %1005 }
 0x2b5   : > { %v1008_v12 = vpop.eup %1007  ;;  %v715_v13 = vadd.f32 1.0, %v1006_v11 }
 0x2b6   : > { %v716_v14 = vadd.f32 1.0, %v1008_v12 }
 0x2b7   : > { %1009 = vrcp.f32 %v715_v13 }
 0x2b8   : > { %1011 = vrcp.f32 %v716_v14 }
 0x2c4   : > { %v1010_v17 = vpop.eup %1009 }
 0x2c5   : > { %v1012_v18 = vpop.eup %1011  ;;  %v723_v19 = vmul.f32 %v1010_v17, %v721_v15 }
 0x2c6   : > { %v724_v20 = vmul.f32 %v1012_v18, %v722_v16 }
 0x2c7   : > { %v725_v21 = vadd.f32 %v723_v19, %v1468_v5 }
 0x2c8   : > { %v726_v22 = vadd.f32 %v724_v20, %v1461_v2 }
 0x2c9   : > { %727 = vst [vmem:[%s342_s11] sm:$0xff] %v725_v21 }
 0x2ca   : > { %728 = vst [vmem:[%s342_s11 + $0x8] sm:$0xff] %v726_v22 }
 0x2cb   : > { %1160 = shalt.err (!%p1157_p9)
}
 0x2cc   : > { %s1161_s15 = scalar_lea.hbm %s1493_s12, 256  ;;  %s1165_s29 = scalar_lea.hbm %s1536_s6, 512 }
 0x2cd   : > { %p1162_p6 = scmp.ne.s32.totalorder %s1493_s12, %s1161_s15  ;;  %p1166_p8 = scmp.lt.s32.totalorder %s1493_s12, %s1536_s6 }
 0x2ce   : > { %p1167_p12 = scmp.lt.s32.totalorder %s1165_s29, %s1161_s15 }
 0x2cf   : > { %p1163_p2 = pnand %p1162_p6, %p1560_p10 }
 0x2d0   : > { %p1168_p5 = por %p1167_p12, %p1166_p8 }
 0x2d1   : > { %p1164_p11 = pneg %p1163_p2 }
 0x2d3   : > { %p1169_p7 = pnand %p1168_p5, %p1164_p11 }
 0x2d5   : > { %1172 = shalt.err (!%p1169_p7)
}
 0x2d6   : > { %918 = dma.vmem_to_hbm [thread:$0]  (%p1560_p10), %s745_s13, 256, %s1493_s12, %s730_s16  }
 0x2d7 PF: > { %s756_s27 = sand.u32 1, %s1211_s21   ;;  %p1561_p13 = scmp.ne.s32.totalorder %s1545_s28, 0 }
 0x2d8   : > { %p1562_p0 = scmp.ge.s32.totalorder %s1223_s24, 2  ;;  %s757_s4 = scalar_lea.sflag [#allocation4], %s756_s27 }
 0x2da   : > { %p938_p1 = pnand %p1562_p0, %p1561_p13 }
 0x2dc   : > { %p939_p3 = pneg %p938_p1 }
 0x2de   : > { %1206 = dma.done.wait (%p939_p3), %s757_s4, 256  }
 0x2df   : > { %1208 = vsyncadd (%p939_p3), %s757_s4, 4294967040  ;;  %p23_p4 = scmp.ge.s32.totalorder %s1354_s30, 4   ;;  %s1563_s21 = smov %s1215_s22 }
 0x2e0   : > { %s1564_s22 = smov %s1219_s23  ;;  %s1565_s23 = smov %s1364_s9 }
 0x2e1   : > { %s1566_s24 = smov %s1354_s30  ;;  %25 = sbr.rel (!%p23_p4) target bundleno = 12 (0xc), region = 114 }
 0x2e6   :  { %762 = vsyncpa [#allocation3], 1 }
 0x2e7   :  { %764 = vsyncpa [#allocation3 + $0x1], 1 }
 0x2e8   :  { %765 = vsyncpa [#allocation6], 1 }
 0x2e9   :  { %767 = vsyncpa [#allocation6 + $0x1], 1 }
 0x2ea   :  { %768 = vsyncpa [#allocation9], 1 }
 0x2eb   :  { %769 = vsyncpa [#allocation4], 1 }
 0x2ec   :  { %771 = vsyncpa [#allocation4 + $0x1], 1 }

</bundles_post_ra>
